<compile_context>
chip_gen: v7x
topology: tpu7x:2x2x1
jax: 0.10.0
libtpu: 0.0.40
codegen_flags: <defaults>
</compile_context>

<pallas_src>
import functools

import jax
import jax.numpy as jnp
from jax.experimental import pallas as pl
from jax.experimental.pallas import tpu as pltpu


def _round_up(x, m):
    return ((x + m - 1) // m) * m


def _cdiv(a, b):
    return (a + b - 1) // b


def _device_kind():
    try:
        return jax.devices()[0].device_kind.lower()
    except Exception:
        return ""


def _vmem_capacity_bytes():
    try:
        cap = int(pltpu.get_tpu_info().vmem_capacity_bytes)
        if cap > 0:
            return cap
    except Exception:
        pass
    kind = _device_kind()
    if "v7" in kind:
        return 64 << 20
    return 128 << 20


def _concat_adapter_kernel(emb_ref, ctx_ref, we_ref, wc_ref, b_ref, out_ref,
                           *, mul_in_act_dtype):
    # nn.RMSNorm(eps=None) uses torch.finfo(float32).eps
    eps = jnp.float32(1.1920928955078125e-07)
    cd = we_ref.dtype  # MXU operand dtype

    def _rmsnorm(ref):
        x = ref[...]
        x32 = x.astype(jnp.float32)
        # mean-of-squares + rsqrt always in f32
        scale = jax.lax.rsqrt(jnp.mean(x32 * x32, axis=-1, keepdims=True) + eps)
        if mul_in_act_dtype:
            # v6e/v7x: bf16 VALU -> multiply in the activation dtype, no big
            # f32 intermediate and no extra downcast pass.
            return (x * scale.astype(x.dtype)).astype(cd)
        # v3/v4/v5: no bf16 VALU -> keep the multiply in f32.
        return (x32 * scale).astype(cd)

    e_n = _rmsnorm(emb_ref)
    c_n = _rmsnorm(ctx_ref)

    y = (jnp.dot(e_n, we_ref[...], preferred_element_type=jnp.float32)
         + jnp.dot(c_n, wc_ref[...], preferred_element_type=jnp.float32)
         + b_ref[...])
    out_ref[...] = y.astype(out_ref.dtype)


def concat_adapter_forward(embeddings, contexts, params, *, block_b=256,
                           compute_in_bf16=None):
    """embeddings, contexts: (B, D) with D == input_size == context_size."""
    B, D = embeddings.shape
    w1, b1, w2, b2 = params["w1"], params["b1"], params["w2"], params["b2"]
    out_size = w2.shape[0]
    assert w2.shape[1] == 2 * D, "adapter expects input_size + context_size"

    act_dtype = embeddings.dtype
    kind = _device_kind()
    is_v7 = "v7" in kind
    no_bf16_valu = any(v in kind for v in ("v2", "v3", "v4", "v5"))

    if compute_in_bf16 is None:
        # default: bf16 MXU path only when the activations are already bf16
        # (keeps the fused-weight f32 accuracy for f32 inputs; opt-in override).
        compute_in_bf16 = (act_dtype == jnp.bfloat16)
    compute_dtype = jnp.bfloat16 if compute_in_bf16 else jnp.float32

    # ---- one-time wrapper-side algebraic fusion of the two Linears (f32) ----
    #   y = rmsnorm(e) @ We + rmsnorm(c) @ Wc + b_fold
    w1t = jnp.asarray(w1, jnp.float32).T            # (D, D)
    w2e_t = jnp.asarray(w2[:, :D], jnp.float32).T   # (D, out)  embeddings half
    w2c_t = jnp.asarray(w2[:, D:], jnp.float32).T   # (D, out)  contexts half
    we = w1t @ w2e_t                                # (D, out)
    wc = w1t @ w2c_t                                # (D, out)
    b_fold = (jnp.asarray(b1, jnp.float32) @ (w2e_t + w2c_t)
              + jnp.asarray(b2, jnp.float32))       # (out,)

    act_bytes = jnp.dtype(act_dtype).itemsize
    w_bytes = jnp.dtype(compute_dtype).itemsize
    vmem_cap = _vmem_capacity_bytes()
    vmem_budget = vmem_cap - (8 << 20)              # leave headroom below physical

    # ---- resident fused weights vs. out_p-tiled grid axis ----
    weight_budget = min(24 << 20, vmem_cap // 2)
    out_p128 = _round_up(max(out_size, 1), 128)
    if 2 * D * out_p128 * w_bytes > weight_budget:
        # N-tiled path: per-tile weights are double-buffered (they change per step).
        tn = (weight_budget // (2 * 2 * D * w_bytes)) // 128 * 128
        tn = int(min(max(tn, 128), 1024))
        out_p = _round_up(max(out_size, 1), tn)
    else:
        tn = None
        out_p = out_p128

    # ---- lane-dense output: zero-pad weights/bias up to out_p ----
    pad_o = out_p - out_size
    if pad_o:
        we = jnp.pad(we, ((0, 0), (0, pad_o)))
        wc = jnp.pad(wc, ((0, 0), (0, pad_o)))
        b_fold = jnp.pad(b_fold, (0, pad_o))
    we = we.astype(compute_dtype)
    wc = wc.astype(compute_dtype)
    b_2d = b_fold.reshape(1, out_p).astype(jnp.float32)

    # ---- batch tiling ----
    sub = 16 if act_dtype == jnp.bfloat16 else 8    # bf16 packs 16 sublanes/vreg
    bb = min(_round_up(block_b, sub), _round_up(B, sub))
    if is_v7 and B > sub:
        # megacore: ensure >= 2 batch grid steps so both TensorCores get work
        bb = min(bb, _round_up(_cdiv(B, 2), sub))

    def _est_vmem(bb_):
        n = tn if tn is not None else out_p
        w_buf = 2 if tn is not None else 1          # resident weights single-buffered
        return (2 * 2 * bb_ * D * act_bytes         # two activation inputs, dbl-buf
                + w_buf * 2 * D * n * w_bytes       # two fused weights
                + w_buf * n * 4                     # bias
                + 2 * bb_ * n * act_bytes           # output, dbl-buf
                + 2 * bb_ * n * 4)                  # f32 intermediates headroom

    while _est_vmem(bb) > vmem_budget and bb > sub:
        bb = max(sub, _round_up(bb // 2, sub))

    B_p = _round_up(B, bb)
    if B_p != B:
        embeddings = jnp.pad(embeddings, ((0, B_p - B), (0, 0)))
        contexts = jnp.pad(contexts, ((0, B_p - B), (0, 0)))

    vmem_limit = int(min(max(_est_vmem(bb) + (4 << 20), 32 << 20), vmem_budget))

    kernel = functools.partial(_concat_adapter_kernel,
                               mul_in_act_dtype=not no_bf16_valu)

    def _run(single_buffer_invariant):
        if tn is None:
            # Weights fully resident; grid over batch tiles only.
            grid = (B_p // bb,)
            if single_buffer_invariant:
                w_spec = pl.BlockSpec((D, out_p), lambda i: (0, 0),
                                      pipeline_mode=pl.Buffered(1))
                b_spec = pl.BlockSpec((1, out_p), lambda i: (0, 0),
                                      pipeline_mode=pl.Buffered(1))
            else:
                w_spec = pl.BlockSpec((D, out_p), lambda i: (0, 0))
                b_spec = pl.BlockSpec((1, out_p), lambda i: (0, 0))
            in_specs = [
                pl.BlockSpec((bb, D), lambda i: (i, 0)),
                pl.BlockSpec((bb, D), lambda i: (i, 0)),
                w_spec, w_spec, b_spec,
            ]
            out_spec = pl.BlockSpec((bb, out_p), lambda i: (i, 0))
            dim_sem = ("parallel",)
        else:
            # Out tiles outer (weights re-used across all batch tiles), batch inner.
            grid = (out_p // tn, B_p // bb)
            in_specs = [
                pl.BlockSpec((bb, D), lambda j, i: (i, 0)),
                pl.BlockSpec((bb, D), lambda j, i: (i, 0)),
                pl.BlockSpec((D, tn), lambda j, i: (0, j)),
                pl.BlockSpec((D, tn), lambda j, i: (0, j)),
                pl.BlockSpec((1, tn), lambda j, i: (0, j)),
            ]
            out_spec = pl.BlockSpec((bb, tn), lambda j, i: (i, j))
            dim_sem = ("parallel", "parallel")

        return pl.pallas_call(
            kernel,
            out_shape=jax.ShapeDtypeStruct((B_p, out_p), act_dtype),
            grid_spec=pltpu.PrefetchScalarGridSpec(
                num_scalar_prefetch=0,
                grid=grid,
                in_specs=in_specs,
                out_specs=out_spec,
            ),
            compiler_params=pltpu.CompilerParams(
                dimension_semantics=dim_sem,
                vmem_limit_bytes=vmem_limit,
            ),
        )(embeddings, contexts, we, wc, b_2d)

    try:
        out = _run(True)
    except Exception:
        # pipeline_mode / Buffered(1) unsupported on this jax version:
        # fall back to default double-buffering (correctness unaffected).
        out = _run(False)

    return out[:B, :out_size]


def _reference(emb, ctx, params):
    eps = 1.1920928955078125e-07

    def transform(x):
        xn = x * jax.lax.rsqrt(jnp.mean(x * x, axis=-1, keepdims=True) + eps)
        return xn @ params["w1"].T + params["b1"]

    et = transform(emb)
    ct = transform(ctx)
    cat = jnp.concatenate([et, ct], axis=1)
    return cat @ params["w2"].T + params["b2"]


def init_params(key, input_size, output_size):
    """Deterministic init mimicking nn.Linear default (uniform +-1/sqrt(fan_in))."""
    context_size = input_size
    k1, k2, k3, k4 = jax.random.split(key, 4)
    bound1 = 1.0 / jnp.sqrt(context_size)
    bound2 = 1.0 / jnp.sqrt(input_size + context_size)
    return {
        # transform Linear: context_size -> input_size, weight (out, in) like torch
        "w1": jax.random.uniform(k1, (input_size, context_size),
                                 jnp.float32, -bound1, bound1),
        "b1": jax.random.uniform(k2, (input_size,), jnp.float32, -bound1, bound1),
        # adapter Linear: (input_size + context_size) -> output_size
        "w2": jax.random.uniform(k3, (output_size, input_size + context_size),
                                 jnp.float32, -bound2, bound2),
        "b2": jax.random.uniform(k4, (output_size,), jnp.float32, -bound2, bound2),
    }


if __name__ == "__main__":
    B, input_size, output_size = 16, 32, 16

    key = jax.random.PRNGKey(0)
    k_emb, k_ctx, k_par = jax.random.split(key, 3)
    embeddings = jax.random.normal(k_emb, (B, input_size), jnp.float32)
    contexts = jax.random.normal(k_ctx, (B, input_size), jnp.float32)
    params = init_params(k_par, input_size, output_size)

    out = concat_adapter_forward(embeddings, contexts, params)
    out = jax.block_until_ready(out)

    ref = _reference(embeddings, contexts, params)
    assert out.shape == (B, output_size)
    # wrapper-side weight fusion changes f32 associativity slightly -> 1e-4 tol
    assert jnp.allclose(out, ref, atol=1e-4, rtol=1e-4), "mismatch vs reference"

    print("KERNEL_OK")
</pallas_src>

<mosaic_0001>
module attributes {stable_mosaic.version = 11 : i64} {
  func.func @_concat_adapter_kernel(%arg0: i32, %arg1: memref<16x32xf32, #tpu.memory_space<vmem>>, %arg2: memref<16x32xf32, #tpu.memory_space<vmem>>, %arg3: memref<32x128xf32, #tpu.memory_space<vmem>>, %arg4: memref<32x128xf32, #tpu.memory_space<vmem>>, %arg5: memref<1x128xf32, #tpu.memory_space<vmem>>, %arg6: memref<16x128xf32, #tpu.memory_space<vmem>>) attributes {dimension_semantics = [#tpu.dimension_semantics<parallel>], iteration_bounds = array<i64: 1>, scalar_prefetch = 0 : i64, scratch_operands = 0 : i64, tpu.core_type = #tpu.core_type<tc>, window_params = [{transform_indices = @transform_0, window_bounds = array<i64: 16, 32>}, {transform_indices = @transform_1, window_bounds = array<i64: 16, 32>}, {pipeline_mode = #tpu.pipeline_mode<synchronous>, transform_indices = @transform_2, window_bounds = array<i64: 32, 128>}, {pipeline_mode = #tpu.pipeline_mode<synchronous>, transform_indices = @transform_3, window_bounds = array<i64: 32, 128>}, {pipeline_mode = #tpu.pipeline_mode<synchronous>, transform_indices = @transform_4, window_bounds = array<i64: 1, 128>}, {transform_indices = @transform_5, window_bounds = array<i64: 16, 128>}]} {
    %c0 = arith.constant 0 : index
    %c0_0 = arith.constant 0 : index
    %0 = vector.load %arg1[%c0, %c0_0] : memref<16x32xf32, #tpu.memory_space<vmem>>, vector<16x32xf32>
    %1 = arith.mulf %0, %0 : vector<16x32xf32>
    %cst = arith.constant dense<0.000000e+00> : vector<16xf32>
    %2 = vector.multi_reduction <add>, %1, %cst [1] : vector<16x32xf32> to vector<16xf32>
    %3 = vector.shape_cast %2 : vector<16xf32> to vector<16x1xf32>
    %cst_1 = arith.constant 3.200000e+01 : f32
    %4 = vector.broadcast %cst_1 : f32 to vector<16x1xf32>
    %5 = arith.divf %3, %4 : vector<16x1xf32>
    %cst_2 = arith.constant 1.1920929E-7 : f32
    %6 = vector.broadcast %cst_2 : f32 to vector<16x1xf32>
    %7 = arith.addf %5, %6 : vector<16x1xf32>
    %8 = math.rsqrt %7 : vector<16x1xf32>
    %9 = vector.broadcast %8 : vector<16x1xf32> to vector<16x32xf32>
    %10 = arith.mulf %0, %9 : vector<16x32xf32>
    %c0_3 = arith.constant 0 : index
    %c0_4 = arith.constant 0 : index
    %11 = vector.load %arg2[%c0_3, %c0_4] : memref<16x32xf32, #tpu.memory_space<vmem>>, vector<16x32xf32>
    %12 = arith.mulf %11, %11 : vector<16x32xf32>
    %cst_5 = arith.constant dense<0.000000e+00> : vector<16xf32>
    %13 = vector.multi_reduction <add>, %12, %cst_5 [1] : vector<16x32xf32> to vector<16xf32>
    %14 = vector.shape_cast %13 : vector<16xf32> to vector<16x1xf32>
    %cst_6 = arith.constant 3.200000e+01 : f32
    %15 = vector.broadcast %cst_6 : f32 to vector<16x1xf32>
    %16 = arith.divf %14, %15 : vector<16x1xf32>
    %cst_7 = arith.constant 1.1920929E-7 : f32
    %17 = vector.broadcast %cst_7 : f32 to vector<16x1xf32>
    %18 = arith.addf %16, %17 : vector<16x1xf32>
    %19 = math.rsqrt %18 : vector<16x1xf32>
    %20 = vector.broadcast %19 : vector<16x1xf32> to vector<16x32xf32>
    %21 = arith.mulf %11, %20 : vector<16x32xf32>
    %c0_8 = arith.constant 0 : index
    %c0_9 = arith.constant 0 : index
    %22 = vector.load %arg3[%c0_8, %c0_9] : memref<32x128xf32, #tpu.memory_space<vmem>>, vector<32x128xf32>
    %cst_10 = arith.constant dense<0.000000e+00> : vector<16x128xf32>
    %23 = tpu.matmul %10, %22, %cst_10 {dimension_numbers = #tpu.dot_dimension_numbers<[1], [0], [0], [1], [0, 0, 1, 1], [], []>} : vector<16x32xf32>, vector<32x128xf32>, vector<16x128xf32> -> vector<16x128xf32>
    %c0_11 = arith.constant 0 : index
    %c0_12 = arith.constant 0 : index
    %24 = vector.load %arg4[%c0_11, %c0_12] : memref<32x128xf32, #tpu.memory_space<vmem>>, vector<32x128xf32>
    %cst_13 = arith.constant dense<0.000000e+00> : vector<16x128xf32>
    %25 = tpu.matmul %21, %24, %cst_13 {dimension_numbers = #tpu.dot_dimension_numbers<[1], [0], [0], [1], [0, 0, 1, 1], [], []>} : vector<16x32xf32>, vector<32x128xf32>, vector<16x128xf32> -> vector<16x128xf32>
    %26 = arith.addf %23, %25 : vector<16x128xf32>
    %c0_14 = arith.constant 0 : index
    %c0_15 = arith.constant 0 : index
    %27 = vector.load %arg5[%c0_14, %c0_15] : memref<1x128xf32, #tpu.memory_space<vmem>>, vector<1x128xf32>
    %28 = vector.broadcast %27 : vector<1x128xf32> to vector<16x128xf32>
    %29 = arith.addf %26, %28 : vector<16x128xf32>
    %c0_16 = arith.constant 0 : index
    %c0_17 = arith.constant 0 : index
    %30 = vector.load %arg6[%c0_16, %c0_17] : memref<16x128xf32, #tpu.memory_space<vmem>>, vector<16x128xf32>
    tpu.vector_store %arg6[%c0_16, %c0_17], %29 {strides = array<i32>} : memref<16x128xf32, #tpu.memory_space<vmem>>, vector<16x128xf32>,
    return
  }
  func.func @transform_0(%arg0: i32) -> (i32, i32) {
    %c0_i32 = arith.constant 0 : i32
    %c0_i32_0 = arith.constant 0 : i32
    return %arg0, %c0_i32 : i32, i32
  }
  func.func @transform_1(%arg0: i32) -> (i32, i32) {
    %c0_i32 = arith.constant 0 : i32
    %c0_i32_0 = arith.constant 0 : i32
    return %arg0, %c0_i32 : i32, i32
  }
  func.func @transform_2(%arg0: i32) -> (i32, i32) {
    %c0_i32 = arith.constant 0 : i32
    %c0_i32_0 = arith.constant 0 : i32
    %c0_i32_1 = arith.constant 0 : i32
    return %c0_i32, %c0_i32_0 : i32, i32
  }
  func.func @transform_3(%arg0: i32) -> (i32, i32) {
    %c0_i32 = arith.constant 0 : i32
    %c0_i32_0 = arith.constant 0 : i32
    %c0_i32_1 = arith.constant 0 : i32
    return %c0_i32, %c0_i32_0 : i32, i32
  }
  func.func @transform_4(%arg0: i32) -> (i32, i32) {
    %c0_i32 = arith.constant 0 : i32
    %c0_i32_0 = arith.constant 0 : i32
    %c0_i32_1 = arith.constant 0 : i32
    return %c0_i32, %c0_i32_0 : i32, i32
  }
  func.func @transform_5(%arg0: i32) -> (i32, i32) {
    %c0_i32 = arith.constant 0 : i32
    %c0_i32_0 = arith.constant 0 : i32
    return %arg0, %c0_i32 : i32, i32
  }
}

module attributes {stable_mosaic.version = 11 : i64} {
  func.func @_concat_adapter_kernel(%arg0: i32, %arg1: memref<16x32xf32, #tpu.memory_space<vmem>>, %arg2: memref<16x32xf32, #tpu.memory_space<vmem>>, %arg3: memref<32x128xf32, #tpu.memory_space<vmem>>, %arg4: memref<32x128xf32, #tpu.memory_space<vmem>>, %arg5: memref<1x128xf32, #tpu.memory_space<vmem>>, %arg6: memref<16x128xf32, #tpu.memory_space<vmem>>) attributes {dimension_semantics = [#tpu.dimension_semantics<parallel>], iteration_bounds = array<i64: 1>, scalar_prefetch = 0 : i64, scratch_operands = 0 : i64, tpu.core_type = #tpu.core_type<tc>, window_params = [{transform_indices = @transform_0, window_bounds = array<i64: 16, 32>}, {transform_indices = @transform_1, window_bounds = array<i64: 16, 32>}, {pipeline_mode = #tpu.pipeline_mode<synchronous>, transform_indices = @transform_2, window_bounds = array<i64: 32, 128>}, {pipeline_mode = #tpu.pipeline_mode<synchronous>, transform_indices = @transform_3, window_bounds = array<i64: 32, 128>}, {pipeline_mode = #tpu.pipeline_mode<synchronous>, transform_indices = @transform_4, window_bounds = array<i64: 1, 128>}, {transform_indices = @transform_5, window_bounds = array<i64: 16, 128>}]} {
    %c0 = arith.constant 0 : index
    %c0_0 = arith.constant 0 : index
    %0 = vector.load %arg1[%c0, %c0_0] : memref<16x32xf32, #tpu.memory_space<vmem>>, vector<16x32xf32>
    %1 = arith.mulf %0, %0 : vector<16x32xf32>
    %cst = arith.constant dense<0.000000e+00> : vector<16xf32>
    %2 = vector.multi_reduction <add>, %1, %cst [1] : vector<16x32xf32> to vector<16xf32>
    %3 = vector.shape_cast %2 : vector<16xf32> to vector<16x1xf32>
    %cst_1 = arith.constant 3.200000e+01 : f32
    %4 = vector.broadcast %cst_1 : f32 to vector<16x1xf32>
    %5 = arith.divf %3, %4 : vector<16x1xf32>
    %cst_2 = arith.constant 1.1920929E-7 : f32
    %6 = vector.broadcast %cst_2 : f32 to vector<16x1xf32>
    %7 = arith.addf %5, %6 : vector<16x1xf32>
    %8 = math.rsqrt %7 : vector<16x1xf32>
    %9 = vector.broadcast %8 : vector<16x1xf32> to vector<16x32xf32>
    %10 = arith.mulf %0, %9 : vector<16x32xf32>
    %c0_3 = arith.constant 0 : index
    %c0_4 = arith.constant 0 : index
    %11 = vector.load %arg2[%c0_3, %c0_4] : memref<16x32xf32, #tpu.memory_space<vmem>>, vector<16x32xf32>
    %12 = arith.mulf %11, %11 : vector<16x32xf32>
    %cst_5 = arith.constant dense<0.000000e+00> : vector<16xf32>
    %13 = vector.multi_reduction <add>, %12, %cst_5 [1] : vector<16x32xf32> to vector<16xf32>
    %14 = vector.shape_cast %13 : vector<16xf32> to vector<16x1xf32>
    %cst_6 = arith.constant 3.200000e+01 : f32
    %15 = vector.broadcast %cst_6 : f32 to vector<16x1xf32>
    %16 = arith.divf %14, %15 : vector<16x1xf32>
    %cst_7 = arith.constant 1.1920929E-7 : f32
    %17 = vector.broadcast %cst_7 : f32 to vector<16x1xf32>
    %18 = arith.addf %16, %17 : vector<16x1xf32>
    %19 = math.rsqrt %18 : vector<16x1xf32>
    %20 = vector.broadcast %19 : vector<16x1xf32> to vector<16x32xf32>
    %21 = arith.mulf %11, %20 : vector<16x32xf32>
    %c0_8 = arith.constant 0 : index
    %c0_9 = arith.constant 0 : index
    %22 = vector.load %arg3[%c0_8, %c0_9] : memref<32x128xf32, #tpu.memory_space<vmem>>, vector<32x128xf32>
    %cst_10 = arith.constant dense<0.000000e+00> : vector<16x128xf32>
    %23 = tpu.matmul %10, %22, %cst_10 {dimension_numbers = #tpu.dot_dimension_numbers<[1], [0], [0], [1], [0, 0, 1, 1], [], []>} : vector<16x32xf32>, vector<32x128xf32>, vector<16x128xf32> -> vector<16x128xf32>
    %c0_11 = arith.constant 0 : index
    %c0_12 = arith.constant 0 : index
    %24 = vector.load %arg4[%c0_11, %c0_12] : memref<32x128xf32, #tpu.memory_space<vmem>>, vector<32x128xf32>
    %cst_13 = arith.constant dense<0.000000e+00> : vector<16x128xf32>
    %25 = tpu.matmul %21, %24, %cst_13 {dimension_numbers = #tpu.dot_dimension_numbers<[1], [0], [0], [1], [0, 0, 1, 1], [], []>} : vector<16x32xf32>, vector<32x128xf32>, vector<16x128xf32> -> vector<16x128xf32>
    %26 = arith.addf %23, %25 : vector<16x128xf32>
    %c0_14 = arith.constant 0 : index
    %c0_15 = arith.constant 0 : index
    %27 = vector.load %arg5[%c0_14, %c0_15] : memref<1x128xf32, #tpu.memory_space<vmem>>, vector<1x128xf32>
    %28 = vector.broadcast %27 : vector<1x128xf32> to vector<16x128xf32>
    %29 = arith.addf %26, %28 : vector<16x128xf32>
    %c0_16 = arith.constant 0 : index
    %c0_17 = arith.constant 0 : index
    %30 = vector.load %arg6[%c0_16, %c0_17] : memref<16x128xf32, #tpu.memory_space<vmem>>, vector<16x128xf32>
    tpu.vector_store %arg6[%c0_16, %c0_17], %29 {strides = array<i32>} : memref<16x128xf32, #tpu.memory_space<vmem>>, vector<16x128xf32>,
    return
  }
  func.func @transform_0(%arg0: i32) -> (i32, i32) {
    %c0_i32 = arith.constant 0 : i32
    %c0_i32_0 = arith.constant 0 : i32
    return %arg0, %c0_i32 : i32, i32
  }
  func.func @transform_1(%arg0: i32) -> (i32, i32) {
    %c0_i32 = arith.constant 0 : i32
    %c0_i32_0 = arith.constant 0 : i32
    return %arg0, %c0_i32 : i32, i32
  }
  func.func @transform_2(%arg0: i32) -> (i32, i32) {
    %c0_i32 = arith.constant 0 : i32
    %c0_i32_0 = arith.constant 0 : i32
    %c0_i32_1 = arith.constant 0 : i32
    return %c0_i32, %c0_i32_0 : i32, i32
  }
  func.func @transform_3(%arg0: i32) -> (i32, i32) {
    %c0_i32 = arith.constant 0 : i32
    %c0_i32_0 = arith.constant 0 : i32
    %c0_i32_1 = arith.constant 0 : i32
    return %c0_i32, %c0_i32_0 : i32, i32
  }
  func.func @transform_4(%arg0: i32) -> (i32, i32) {
    %c0_i32 = arith.constant 0 : i32
    %c0_i32_0 = arith.constant 0 : i32
    %c0_i32_1 = arith.constant 0 : i32
    return %c0_i32, %c0_i32_0 : i32, i32
  }
  func.func @transform_5(%arg0: i32) -> (i32, i32) {
    %c0_i32 = arith.constant 0 : i32
    %c0_i32_0 = arith.constant 0 : i32
    return %arg0, %c0_i32 : i32, i32
  }
}

</mosaic_0001>

<bundles_post_ra>
// kernel: tpu_custom_call.1
= control target key start
LH: loop header
LB: loop body
LE: loop exit
PB: predicated region body
PF: predicated region fallthrough
CT: control target
= control target key end

     0   :  { %10 = vsyncpa [#allocation3], 0  ;;  %s641_s0 = inlined_call_operand.hbm [shape: f32[16,32], index: 0, kind: input, shape index: {}]   ;;  %s642_s1 = inlined_call_operand.hbm [shape: f32[16,32], index: 1, kind: input, shape index: {}]   ;;  %s643_s2 = inlined_call_operand.hbm [shape: f32[32,128], index: 2, kind: input, shape index: {}]   ;;  %s644_s3 = inlined_call_operand.hbm [shape: f32[32,128], index: 3, kind: input, shape index: {}]   ;;  %s645_s4 = inlined_call_operand.vmem [shape: f32[1,128], index: 4, kind: input, shape index: {}]   ;;  %s646_s5 = inlined_call_operand.hbm [shape: f32[16,128], index: 5, kind: output, shape index: {}]  }
   0x1   :  { %11 = vsyncpa [#allocation6], 0 }
   0x2   :  { %12 = vsyncpa [#allocation9], 0 }
   0x3   :  { %13 = vsyncpa [#allocation4], 0  ;;  %s504_s18 = smov [#allocation5]   ;;  %s505_s20 = smov [#allocation2]  }
   0x4   :  { %s31_s19 = sshll.u32 %s504_s18, 4  ;;  %s19_s21 = sshll.u32 %s505_s20, 4  ;;  %s32_s19 = int_to_ptr.vmem [resolvable:$true] %s31_s19  ;;  %s541_s21 = int_to_ptr.vmem [resolvable:$true] %s19_s21 }
   0x5   :  { %s386_s24 = scalar_lea.hbm %s642_s1, 256 }
   0x6   :  { %p387_p0 = scmp.ne.s32.totalorder %s642_s1, %s386_s24  ;;  %p390_p1 = scmp.lt.u32.totalorder %s386_s24, %s642_s1 }
   0x8   :  { %p392_p2 = pnand %p390_p1, %p387_p0 }
   0xa   :  { %395 = shalt.err (!%p392_p2)
}
   0xb   :  { %s396_s29 = scalar_lea.vmem %s32_s19, 256  ;;  %p401_p4 = scmp.lt.s32.totalorder %s32_s19, %s32_s19 }
   0xc   :  { %p397_p3 = scmp.ne.s32.totalorder %s32_s19, %s396_s29  ;;  %p402_p5 = scmp.lt.s32.totalorder %s396_s29, %s396_s29 }
   0xe   :  { %p403_p6 = por %p402_p5, %p401_p4 }
  0x10   :  { %p404_p7 = pnand %p403_p6, %p397_p3 }
  0x12   :  { %407 = shalt.err (!%p404_p7)
}
  0x13   :  { %s506_s30 = smov 128   ;;  %s507_s6 = smov 8  }
  0x14   :  { %37 = dma.hbm_to_vmem [thread:$0]  %s642_s1, 256, %s32_s19, [#allocation6], %s506_s30, %s506_s30, %s507_s6  }
  0x15   :  { %s408_s11 = scalar_lea.hbm %s641_s0, 256 }
  0x16   :  { %p409_p8 = scmp.ne.s32.totalorder %s641_s0, %s408_s11  ;;  %p412_p9 = scmp.lt.u32.totalorder %s408_s11, %s641_s0 }
  0x18   :  { %p414_p10 = pnand %p412_p9, %p409_p8 }
  0x1a   :  { %417 = shalt.err (!%p414_p10)
}
  0x1b   :  { %s418_s16 = scalar_lea.vmem %s541_s21, 256  ;;  %p423_p12 = scmp.lt.s32.totalorder %s541_s21, %s541_s21 }
  0x1c   :  { %p419_p11 = scmp.ne.s32.totalorder %s541_s21, %s418_s16  ;;  %p424_p13 = scmp.lt.s32.totalorder %s418_s16, %s418_s16 }
  0x1e   :  { %p425_p0 = por %p424_p13, %p423_p12 }
  0x20   :  { %p426_p1 = pnand %p425_p0, %p419_p11 }
  0x22   :  { %429 = shalt.err (!%p426_p1)
}
  0x23   :  { %25 = dma.hbm_to_vmem [thread:$0]  %s641_s0, 256, %s541_s21, [#allocation3], %s506_s30, %s506_s30, %s507_s6  }
  0x24   :  { %s508_s18 = smov [#allocation7]   ;;  %s509_s20 = smov [#allocation8]  }
  0x25   :  { %s43_s19 = sshll.u32 %s508_s18, 4  ;;  %s55_s22 = sshll.u32 %s509_s20, 4  ;;  %s44_s19 = int_to_ptr.vmem [resolvable:$true] %s43_s19  ;;  %s578_s22 = int_to_ptr.vmem [resolvable:$true] %s55_s22 }
  0x26   :  { %s430_s25 = scalar_lea.hbm %s643_s2, 512 }
  0x27   :  { %p431_p2 = scmp.ne.s32.totalorder %s643_s2, %s430_s25  ;;  %p434_p3 = scmp.lt.u32.totalorder %s430_s25, %s643_s2 }
  0x29   :  { %p436_p4 = pnand %p434_p3, %p431_p2 }
  0x2b   :  { %439 = shalt.err (!%p436_p4)
}
  0x2c   :  { %s440_s0 = scalar_lea.vmem %s44_s19, 512  ;;  %p445_p6 = scmp.lt.s32.totalorder %s44_s19, %s44_s19 }
  0x2d   :  { %p441_p5 = scmp.ne.s32.totalorder %s44_s19, %s440_s0  ;;  %p446_p7 = scmp.lt.s32.totalorder %s440_s0, %s440_s0 }
  0x2f   :  { %p447_p8 = por %p446_p7, %p445_p6 }
  0x31   :  { %p448_p9 = pnand %p447_p8, %p441_p5 }
  0x33   :  { %451 = shalt.err (!%p448_p9)
}
  0x34   :  { %49 = dma.hbm_to_vmem [thread:$0]  %s643_s2, 512, %s44_s19, [#allocation6], %s506_s30, %s506_s30, %s507_s6  }
  0x35   :  { %s452_s10 = scalar_lea.hbm %s644_s3, 512 }
  0x36   :  { %p453_p10 = scmp.ne.s32.totalorder %s644_s3, %s452_s10  ;;  %p456_p11 = scmp.lt.u32.totalorder %s452_s10, %s644_s3 }
  0x38   :  { %p458_p12 = pnand %p456_p11, %p453_p10 }
  0x3a   :  { %461 = shalt.err (!%p458_p12)
}
  0x3b   :  { %s462_s15 = scalar_lea.vmem %s578_s22, 512  ;;  %p467_p0 = scmp.lt.s32.totalorder %s578_s22, %s578_s22 }
  0x3c   :  { %p463_p13 = scmp.ne.s32.totalorder %s578_s22, %s462_s15  ;;  %p468_p1 = scmp.lt.s32.totalorder %s462_s15, %s462_s15 }
  0x3e   :  { %p469_p2 = por %p468_p1, %p467_p0 }
  0x40   :  { %p470_p3 = pnand %p469_p2, %p463_p13 }
  0x42   :  { %473 = shalt.err (!%p470_p3)
}
  0x43   :  { %61 = dma.hbm_to_vmem [thread:$0]  %s644_s3, 512, %s578_s22, [#allocation9], %s506_s30, %s506_s30, %s507_s6  }
  0x44   :  { %496 = dma.done.wait [#allocation3], 256  }
  0x45   :  { %497 = vsyncadd [#allocation3], 4294967040 }
  0x46   :  { %498 = dma.done.wait [#allocation6], 768  }
  0x47   :  { %499 = vsyncadd [#allocation6], 4294966528 }
  0x48   :  { %500 = dma.done.wait [#allocation9], 512  }
  0x49   :  { %501 = vsyncadd [#allocation9], 4294966784  ;;  %v76_v0 = vld [vmem:[#allocation2] sm:$0xff]  ;;  %vm80_vm0 = vcmask 261120   ;;  %v77_v1 = vld [vmem:[#allocation2 + $0x8] sm:$0xff]  ;;  %s510_s17 = smov [#allocation10]  }
  0x4a   :  { %v96_v2 = vld [vmem:[#allocation5] sm:$0xff]  ;;  %v78_v3 = vmul.f32 %v76_v0, %v76_v0  ;;  %v79_v4 = vmul.f32 %v77_v1, %v77_v1  ;;  %v97_v6 = vld [vmem:[#allocation5 + $0x8] sm:$0xff]  ;;  %v114_v12 = vld [vmem:[#allocation7] sm:$0xff]  ;;  %s300_s18 = sshll.u32 %s510_s17, 4  ;;  %s301_s18 = int_to_ptr.vmem [resolvable:$true] %s300_s18 }
  0x4b   :  { %v98_v5 = vmul.f32 %v96_v2, %v96_v2  ;;  %v99_v7 = vmul.f32 %v97_v6, %v97_v6  ;;  %v115_v13 = vld [vmem:[#allocation7 + $0x8] sm:$0xff]  ;;  %v118_v15 = vld [vmem:[#allocation8] sm:$0xff]  ;;  %v116_v17 = vld [vmem:[#allocation7 + $0x10] sm:$0xff]  ;;  %s474_s19 = scalar_lea.vmem %s301_s18, 256  ;;  %p479_p5 = scmp.lt.s32.totalorder %s301_s18, %s301_s18 }
  0x4c   :  { %v81_v8 = vsel %vm80_vm0, %v78_v3, 0.0  ;;  %v84_v9 = vsel %vm80_vm0, %v79_v4, 0.0  ;;  %v361_v14 = vpack.c.bf16 %v115_v13, %v114_v12  ;;  %v119_v16 = vld [vmem:[#allocation8 + $0x8] sm:$0xff]  ;;  %v117_v19 = vld [vmem:[#allocation7 + $0x18] sm:$0xff]  ;;  %v120_v21 = vld [vmem:[#allocation8 + $0x10] sm:$0xff]  ;;  %p475_p4 = scmp.ne.s32.totalorder %s301_s18, %s474_s19  ;;  %p480_p6 = scmp.lt.s32.totalorder %s474_s19, %s474_s19 }
  0x4d   :  { %82 = vadd.xlane.f32.xlu0 %v81_v8  ;;  %85 = vadd.xlane.f32.xlu1 %v84_v9  ;;  %v100_v10 = vsel %vm80_vm0, %v98_v5, 0.0  ;;  %v103_v11 = vsel %vm80_vm0, %v99_v7, 0.0  ;;  %v353_v18 = vpack.c.bf16 %v119_v16, %v118_v15  ;;  %v365_v20 = vpack.c.bf16 %v117_v19, %v116_v17  ;;  %v121_v22 = vld [vmem:[#allocation8 + $0x18] sm:$0xff]  ;;  %v318_v47 = vld [vmem:[%s645_s4] ss:$0 sm:$0xff] }
  0x4e   :  { %362 = vmatprep.subr.bf16.mxu0 %v361_v14  ;;  %v357_v23 = vpack.c.bf16 %v121_v22, %v120_v21  ;;  %p481_p7 = por %p480_p6, %p479_p5 }
  0x4f   :  { %364 = vmatpush3.bf16.msra.mxu0 %v361_v14  ;;  %354 = vmatprep.subr.bf16.mxu1 %v353_v18 }
  0x50   :  { %366 = vmatprep.subr.bf16.mxu0 %v365_v20  ;;  %356 = vmatpush3.bf16.msra.mxu1 %v353_v18  ;;  %p482_p8 = pnand %p481_p7, %p475_p4 }
  0x51   :  { %101 = vadd.xlane.f32.xlu0 %v100_v10  ;;  %104 = vadd.xlane.f32.xlu1 %v103_v11 }
  0x52   :  { %358 = vmatprep.subr.bf16.mxu1 %v357_v23 }
  0x53   :  { %368 = vmatpush3.bf16.msra.mxu0 %v365_v20 }
  0x54   :  { %360 = vmatpush3.bf16.msra.mxu1 %v357_v23 }
  0xda   :  { %v83_v24 = vpop.xlane.xlu0 %82  ;;  %v86_v25 = vpop.xlane.xlu1 %85 }
  0xdb   :  { %v88_v26 = vmul.f32 0.03125, %v83_v24  ;;  %v89_v27 = vmul.f32 0.03125, %v86_v25 }
  0xdd   :  { %v90_v28 = vadd.f32 1.1920929e-07, %v88_v26  ;;  %v91_v29 = vadd.f32 1.1920929e-07, %v89_v27 }
  0xde   :  { %v102_v30 = vpop.xlane.xlu0 %101  ;;  %v105_v31 = vpop.xlane.xlu1 %104 }
  0xdf   :  { %378 = vrsqrt.f32 %v90_v28  ;;  %v106_v32 = vmul.f32 0.03125, %v102_v30  ;;  %v107_v33 = vmul.f32 0.03125, %v105_v31 }
  0xe0   :  { %380 = vrsqrt.f32 %v91_v29 }
  0xe1   :  { %v108_v34 = vadd.f32 1.1920929e-07, %v106_v32  ;;  %v109_v35 = vadd.f32 1.1920929e-07, %v107_v33 }
  0xe3   :  { %382 = vrsqrt.f32 %v108_v34 }
  0xe4   :  { %384 = vrsqrt.f32 %v109_v35 }
  0xe9   :  { %v379_v36 = vpop.eup %378 }
  0xea   :  { %v381_v37 = vpop.eup %380  ;;  %v94_v38 = vmul.f32 %v379_v36, %v76_v0 }
  0xeb   :  { %v95_v39 = vmul.f32 %v381_v37, %v77_v1 }
  0xec   :  { %350 = vmatprep.mubr.msk.f32.mxu0 %vm80_vm0, %v94_v38 }
  0xed   :  { %v383_v40 = vpop.eup %382  ;;  %351 = vmatmul.mubr.msk.f32.vlgmr.msra.gmra.mrb[0].mxu0 %vm80_vm0, %v95_v39 }
  0xee   :  { %v385_v41 = vpop.eup %384  ;;  %v112_v42 = vmul.f32 %v383_v40, %v96_v2 }
  0xef   :  { %v113_v43 = vmul.f32 %v385_v41, %v97_v6 }
  0xf0   :  { %339 = vmatprep.mubr.msk.f32.mxu1 %vm80_vm0, %v112_v42 }
  0xf1   :  { %340 = vmatmul.mubr.msk.f32.vlgmr.msra.gmra.mrb[0].mxu1 %vm80_vm0, %v113_v43 }
 0x1c0   :  { %v352_v44 = vpop.f32.mrb[0].mxu0 }
 0x1c1   :  { %v275_v45 = vpop.f32.mrb[1].mxu0 }
 0x1c4   :  { %v341_v46 = vpop.f32.mrb[0].mxu1 }
 0x1c5   :  { %v281_v48 = vadd.f32 %v352_v44, %v341_v46  ;;  %v194_v49 = vpop.f32.mrb[1].mxu1 }
 0x1c6   :  { %v276_v50 = vadd.f32 %v275_v45, %v194_v49 }
 0x1c7   :  { %v292_v51 = vadd.f32 %v318_v47, %v281_v48 }
 0x1c8   :  { %v291_v52 = vadd.f32 %v318_v47, %v276_v50 }
 0x1c9   :  { %294 = vst [vmem:[#allocation10 + $0x8] sm:$0xff] %v292_v51 }
 0x1ca   :  { %293 = vst [vmem:[#allocation10] sm:$0xff] %v291_v52 }
 0x1cb   :  { %485 = shalt.err (!%p482_p8)
}
 0x1cc   :  { %s486_s4 = scalar_lea.hbm %s646_s5, 256 }
 0x1cd   :  { %p487_p9 = scmp.ne.s32.totalorder %s646_s5, %s486_s4  ;;  %p490_p10 = scmp.lt.u32.totalorder %s486_s4, %s646_s5 }
 0x1cf   :  { %p492_p11 = pnand %p490_p10, %p487_p9 }
 0x1d1   :  { %495 = shalt.err (!%p492_p11)
}
 0x1d2   :  { %306 = dma.vmem_to_hbm [thread:$0]  %s301_s18, 256, %s646_s5, [#allocation4], %s506_s30, %s506_s30, %s507_s6  }
 0x1d3   :  { %502 = dma.done.wait [#allocation4], 256  }
 0x1d4   :  { %503 = vsyncadd [#allocation4], 4294967040 }
 0x1d5   :  { %310 = vsyncpa [#allocation3], 1 }
 0x1d6   :  { %311 = vsyncpa [#allocation6], 1 }
 0x1d7   :  { %312 = vsyncpa [#allocation9], 1 }
 0x1d8   :  { %313 = vsyncpa [#allocation4], 1 }

// kernel: tpu_custom_call.1
= control target key start
LH: loop header
LB: loop body
LE: loop exit
PB: predicated region body
PF: predicated region fallthrough
CT: control target
= control target key end

     0   :  { %10 = vsyncpa [#allocation3], 0  ;;  %s641_s0 = inlined_call_operand.hbm [shape: f32[16,32], index: 0, kind: input, shape index: {}]   ;;  %s642_s1 = inlined_call_operand.hbm [shape: f32[16,32], index: 1, kind: input, shape index: {}]   ;;  %s643_s2 = inlined_call_operand.hbm [shape: f32[32,128], index: 2, kind: input, shape index: {}]   ;;  %s644_s3 = inlined_call_operand.hbm [shape: f32[32,128], index: 3, kind: input, shape index: {}]   ;;  %s645_s4 = inlined_call_operand.vmem [shape: f32[1,128], index: 4, kind: input, shape index: {}]   ;;  %s646_s5 = inlined_call_operand.hbm [shape: f32[16,128], index: 5, kind: output, shape index: {}]  }
   0x1   :  { %11 = vsyncpa [#allocation6], 0 }
   0x2   :  { %12 = vsyncpa [#allocation9], 0 }
   0x3   :  { %13 = vsyncpa [#allocation4], 0  ;;  %s504_s18 = smov [#allocation5]   ;;  %s505_s20 = smov [#allocation2]  }
   0x4   :  { %s31_s19 = sshll.u32 %s504_s18, 4  ;;  %s19_s21 = sshll.u32 %s505_s20, 4  ;;  %s32_s19 = int_to_ptr.vmem [resolvable:$true] %s31_s19  ;;  %s541_s21 = int_to_ptr.vmem [resolvable:$true] %s19_s21 }
   0x5   :  { %s386_s24 = scalar_lea.hbm %s642_s1, 256 }
   0x6   :  { %p387_p0 = scmp.ne.s32.totalorder %s642_s1, %s386_s24  ;;  %p390_p1 = scmp.lt.u32.totalorder %s386_s24, %s642_s1 }
   0x8   :  { %p392_p2 = pnand %p390_p1, %p387_p0 }
   0xa   :  { %395 = shalt.err (!%p392_p2)
}
   0xb   :  { %s396_s29 = scalar_lea.vmem %s32_s19, 256  ;;  %p401_p4 = scmp.lt.s32.totalorder %s32_s19, %s32_s19 }
   0xc   :  { %p397_p3 = scmp.ne.s32.totalorder %s32_s19, %s396_s29  ;;  %p402_p5 = scmp.lt.s32.totalorder %s396_s29, %s396_s29 }
   0xe   :  { %p403_p6 = por %p402_p5, %p401_p4 }
  0x10   :  { %p404_p7 = pnand %p403_p6, %p397_p3 }
  0x12   :  { %407 = shalt.err (!%p404_p7)
}
  0x13   :  { %s506_s30 = smov 128   ;;  %s507_s6 = smov 8  }
  0x14   :  { %37 = dma.hbm_to_vmem [thread:$0]  %s642_s1, 256, %s32_s19, [#allocation6], %s506_s30, %s506_s30, %s507_s6  }
  0x15   :  { %s408_s11 = scalar_lea.hbm %s641_s0, 256 }
  0x16   :  { %p409_p8 = scmp.ne.s32.totalorder %s641_s0, %s408_s11  ;;  %p412_p9 = scmp.lt.u32.totalorder %s408_s11, %s641_s0 }
  0x18   :  { %p414_p10 = pnand %p412_p9, %p409_p8 }
  0x1a   :  { %417 = shalt.err (!%p414_p10)
}
  0x1b   :  { %s418_s16 = scalar_lea.vmem %s541_s21, 256  ;;  %p423_p12 = scmp.lt.s32.totalorder %s541_s21, %s541_s21 }
  0x1c   :  { %p419_p11 = scmp.ne.s32.totalorder %s541_s21, %s418_s16  ;;  %p424_p13 = scmp.lt.s32.totalorder %s418_s16, %s418_s16 }
  0x1e   :  { %p425_p0 = por %p424_p13, %p423_p12 }
  0x20   :  { %p426_p1 = pnand %p425_p0, %p419_p11 }
  0x22   :  { %429 = shalt.err (!%p426_p1)
}
  0x23   :  { %25 = dma.hbm_to_vmem [thread:$0]  %s641_s0, 256, %s541_s21, [#allocation3], %s506_s30, %s506_s30, %s507_s6  }
  0x24   :  { %s508_s18 = smov [#allocation7]   ;;  %s509_s20 = smov [#allocation8]  }
  0x25   :  { %s43_s19 = sshll.u32 %s508_s18, 4  ;;  %s55_s22 = sshll.u32 %s509_s20, 4  ;;  %s44_s19 = int_to_ptr.vmem [resolvable:$true] %s43_s19  ;;  %s578_s22 = int_to_ptr.vmem [resolvable:$true] %s55_s22 }
  0x26   :  { %s430_s25 = scalar_lea.hbm %s643_s2, 512 }
  0x27   :  { %p431_p2 = scmp.ne.s32.totalorder %s643_s2, %s430_s25  ;;  %p434_p3 = scmp.lt.u32.totalorder %s430_s25, %s643_s2 }
  0x29   :  { %p436_p4 = pnand %p434_p3, %p431_p2 }
  0x2b   :  { %439 = shalt.err (!%p436_p4)
}
  0x2c   :  { %s440_s0 = scalar_lea.vmem %s44_s19, 512  ;;  %p445_p6 = scmp.lt.s32.totalorder %s44_s19, %s44_s19 }
  0x2d   :  { %p441_p5 = scmp.ne.s32.totalorder %s44_s19, %s440_s0  ;;  %p446_p7 = scmp.lt.s32.totalorder %s440_s0, %s440_s0 }
  0x2f   :  { %p447_p8 = por %p446_p7, %p445_p6 }
  0x31   :  { %p448_p9 = pnand %p447_p8, %p441_p5 }
  0x33   :  { %451 = shalt.err (!%p448_p9)
}
  0x34   :  { %49 = dma.hbm_to_vmem [thread:$0]  %s643_s2, 512, %s44_s19, [#allocation6], %s506_s30, %s506_s30, %s507_s6  }
  0x35   :  { %s452_s10 = scalar_lea.hbm %s644_s3, 512 }
  0x36   :  { %p453_p10 = scmp.ne.s32.totalorder %s644_s3, %s452_s10  ;;  %p456_p11 = scmp.lt.u32.totalorder %s452_s10, %s644_s3 }
  0x38   :  { %p458_p12 = pnand %p456_p11, %p453_p10 }
  0x3a   :  { %461 = shalt.err (!%p458_p12)
}
  0x3b   :  { %s462_s15 = scalar_lea.vmem %s578_s22, 512  ;;  %p467_p0 = scmp.lt.s32.totalorder %s578_s22, %s578_s22 }
  0x3c   :  { %p463_p13 = scmp.ne.s32.totalorder %s578_s22, %s462_s15  ;;  %p468_p1 = scmp.lt.s32.totalorder %s462_s15, %s462_s15 }
  0x3e   :  { %p469_p2 = por %p468_p1, %p467_p0 }
  0x40   :  { %p470_p3 = pnand %p469_p2, %p463_p13 }
  0x42   :  { %473 = shalt.err (!%p470_p3)
}
  0x43   :  { %61 = dma.hbm_to_vmem [thread:$0]  %s644_s3, 512, %s578_s22, [#allocation9], %s506_s30, %s506_s30, %s507_s6  }
  0x44   :  { %496 = dma.done.wait [#allocation3], 256  }
  0x45   :  { %497 = vsyncadd [#allocation3], 4294967040 }
  0x46   :  { %498 = dma.done.wait [#allocation6], 768  }
  0x47   :  { %499 = vsyncadd [#allocation6], 4294966528 }
  0x48   :  { %500 = dma.done.wait [#allocation9], 512  }
  0x49   :  { %501 = vsyncadd [#allocation9], 4294966784  ;;  %v76_v0 = vld [vmem:[#allocation2] sm:$0xff]  ;;  %vm80_vm0 = vcmask 261120   ;;  %v77_v1 = vld [vmem:[#allocation2 + $0x8] sm:$0xff]  ;;  %s510_s17 = smov [#allocation10]  }
  0x4a   :  { %v96_v2 = vld [vmem:[#allocation5] sm:$0xff]  ;;  %v78_v3 = vmul.f32 %v76_v0, %v76_v0  ;;  %v79_v4 = vmul.f32 %v77_v1, %v77_v1  ;;  %v97_v6 = vld [vmem:[#allocation5 + $0x8] sm:$0xff]  ;;  %v114_v12 = vld [vmem:[#allocation7] sm:$0xff]  ;;  %s300_s18 = sshll.u32 %s510_s17, 4  ;;  %s301_s18 = int_to_ptr.vmem [resolvable:$true] %s300_s18 }
  0x4b   :  { %v98_v5 = vmul.f32 %v96_v2, %v96_v2  ;;  %v99_v7 = vmul.f32 %v97_v6, %v97_v6  ;;  %v115_v13 = vld [vmem:[#allocation7 + $0x8] sm:$0xff]  ;;  %v118_v15 = vld [vmem:[#allocation8] sm:$0xff]  ;;  %v116_v17 = vld [vmem:[#allocation7 + $0x10] sm:$0xff]  ;;  %s474_s19 = scalar_lea.vmem %s301_s18, 256  ;;  %p479_p5 = scmp.lt.s32.totalorder %s301_s18, %s301_s18 }
  0x4c   :  { %v81_v8 = vsel %vm80_vm0, %v78_v3, 0.0  ;;  %v84_v9 = vsel %vm80_vm0, %v79_v4, 0.0  ;;  %v361_v14 = vpack.c.bf16 %v115_v13, %v114_v12  ;;  %v119_v16 = vld [vmem:[#allocation8 + $0x8] sm:$0xff]  ;;  %v117_v19 = vld [vmem:[#allocation7 + $0x18] sm:$0xff]  ;;  %v120_v21 = vld [vmem:[#allocation8 + $0x10] sm:$0xff]  ;;  %p475_p4 = scmp.ne.s32.totalorder %s301_s18, %s474_s19  ;;  %p480_p6 = scmp.lt.s32.totalorder %s474_s19, %s474_s19 }
  0x4d   :  { %82 = vadd.xlane.f32.xlu0 %v81_v8  ;;  %85 = vadd.xlane.f32.xlu1 %v84_v9  ;;  %v100_v10 = vsel %vm80_vm0, %v98_v5, 0.0  ;;  %v103_v11 = vsel %vm80_vm0, %v99_v7, 0.0  ;;  %v353_v18 = vpack.c.bf16 %v119_v16, %v118_v15  ;;  %v365_v20 = vpack.c.bf16 %v117_v19, %v116_v17  ;;  %v121_v22 = vld [vmem:[#allocation8 + $0x18] sm:$0xff]  ;;  %v318_v47 = vld [vmem:[%s645_s4] ss:$0 sm:$0xff] }
  0x4e   :  { %362 = vmatprep.subr.bf16.mxu0 %v361_v14  ;;  %v357_v23 = vpack.c.bf16 %v121_v22, %v120_v21  ;;  %p481_p7 = por %p480_p6, %p479_p5 }
  0x4f   :  { %364 = vmatpush3.bf16.msra.mxu0 %v361_v14  ;;  %354 = vmatprep.subr.bf16.mxu1 %v353_v18 }
  0x50   :  { %366 = vmatprep.subr.bf16.mxu0 %v365_v20  ;;  %356 = vmatpush3.bf16.msra.mxu1 %v353_v18  ;;  %p482_p8 = pnand %p481_p7, %p475_p4 }
  0x51   :  { %101 = vadd.xlane.f32.xlu0 %v100_v10  ;;  %104 = vadd.xlane.f32.xlu1 %v103_v11 }
  0x52   :  { %358 = vmatprep.subr.bf16.mxu1 %v357_v23 }
  0x53   :  { %368 = vmatpush3.bf16.msra.mxu0 %v365_v20 }
  0x54   :  { %360 = vmatpush3.bf16.msra.mxu1 %v357_v23 }
  0xda   :  { %v83_v24 = vpop.xlane.xlu0 %82  ;;  %v86_v25 = vpop.xlane.xlu1 %85 }
  0xdb   :  { %v88_v26 = vmul.f32 0.03125, %v83_v24  ;;  %v89_v27 = vmul.f32 0.03125, %v86_v25 }
  0xdd   :  { %v90_v28 = vadd.f32 1.1920929e-07, %v88_v26  ;;  %v91_v29 = vadd.f32 1.1920929e-07, %v89_v27 }
  0xde   :  { %v102_v30 = vpop.xlane.xlu0 %101  ;;  %v105_v31 = vpop.xlane.xlu1 %104 }
  0xdf   :  { %378 = vrsqrt.f32 %v90_v28  ;;  %v106_v32 = vmul.f32 0.03125, %v102_v30  ;;  %v107_v33 = vmul.f32 0.03125, %v105_v31 }
  0xe0   :  { %380 = vrsqrt.f32 %v91_v29 }
  0xe1   :  { %v108_v34 = vadd.f32 1.1920929e-07, %v106_v32  ;;  %v109_v35 = vadd.f32 1.1920929e-07, %v107_v33 }
  0xe3   :  { %382 = vrsqrt.f32 %v108_v34 }
  0xe4   :  { %384 = vrsqrt.f32 %v109_v35 }
  0xe9   :  { %v379_v36 = vpop.eup %378 }
  0xea   :  { %v381_v37 = vpop.eup %380  ;;  %v94_v38 = vmul.f32 %v379_v36, %v76_v0 }
  0xeb   :  { %v95_v39 = vmul.f32 %v381_v37, %v77_v1 }
  0xec   :  { %350 = vmatprep.mubr.msk.f32.mxu0 %vm80_vm0, %v94_v38 }
  0xed   :  { %v383_v40 = vpop.eup %382  ;;  %351 = vmatmul.mubr.msk.f32.vlgmr.msra.gmra.mrb[0].mxu0 %vm80_vm0, %v95_v39 }
  0xee   :  { %v385_v41 = vpop.eup %384  ;;  %v112_v42 = vmul.f32 %v383_v40, %v96_v2 }
  0xef   :  { %v113_v43 = vmul.f32 %v385_v41, %v97_v6 }
  0xf0   :  { %339 = vmatprep.mubr.msk.f32.mxu1 %vm80_vm0, %v112_v42 }
  0xf1   :  { %340 = vmatmul.mubr.msk.f32.vlgmr.msra.gmra.mrb[0].mxu1 %vm80_vm0, %v113_v43 }
 0x1c0   :  { %v352_v44 = vpop.f32.mrb[0].mxu0 }
 0x1c1   :  { %v275_v45 = vpop.f32.mrb[1].mxu0 }
 0x1c4   :  { %v341_v46 = vpop.f32.mrb[0].mxu1 }
 0x1c5   :  { %v281_v48 = vadd.f32 %v352_v44, %v341_v46  ;;  %v194_v49 = vpop.f32.mrb[1].mxu1 }
 0x1c6   :  { %v276_v50 = vadd.f32 %v275_v45, %v194_v49 }
 0x1c7   :  { %v292_v51 = vadd.f32 %v318_v47, %v281_v48 }
 0x1c8   :  { %v291_v52 = vadd.f32 %v318_v47, %v276_v50 }
 0x1c9   :  { %294 = vst [vmem:[#allocation10 + $0x8] sm:$0xff] %v292_v51 }
 0x1ca   :  { %293 = vst [vmem:[#allocation10] sm:$0xff] %v291_v52 }
 0x1cb   :  { %485 = shalt.err (!%p482_p8)
}
 0x1cc   :  { %s486_s4 = scalar_lea.hbm %s646_s5, 256 }
 0x1cd   :  { %p487_p9 = scmp.ne.s32.totalorder %s646_s5, %s486_s4  ;;  %p490_p10 = scmp.lt.u32.totalorder %s486_s4, %s646_s5 }
 0x1cf   :  { %p492_p11 = pnand %p490_p10, %p487_p9 }
 0x1d1   :  { %495 = shalt.err (!%p492_p11)
}
 0x1d2   :  { %306 = dma.vmem_to_hbm [thread:$0]  %s301_s18, 256, %s646_s5, [#allocation4], %s506_s30, %s506_s30, %s507_s6  }
 0x1d3   :  { %502 = dma.done.wait [#allocation4], 256  }
 0x1d4   :  { %503 = vsyncadd [#allocation4], 4294967040 }
 0x1d5   :  { %310 = vsyncpa [#allocation3], 1 }
 0x1d6   :  { %311 = vsyncpa [#allocation6], 1 }
 0x1d7   :  { %312 = vsyncpa [#allocation9], 1 }
 0x1d8   :  { %313 = vsyncpa [#allocation4], 1 }

</bundles_post_ra>
